<compile_context>
chip_gen: v7x
topology: tpu7x:2x2x1
jax: 0.10.0
libtpu: 0.0.40
codegen_flags: <defaults>
</compile_context>

<pallas_src>
import functools
import itertools

import jax
import jax.numpy as jnp
import numpy as np
from jax.experimental import pallas as pl
from jax.experimental.pallas import tpu as pltpu


def _round_up(x: int, m: int) -> int:
    return (x + m - 1) // m * m


def _cost_matrix_kernel(cost_class_w, cost_bbox_w, cost_giou_w,
                        logits_ref, boxes_ref, tgt_t_ref, posmap_t_ref, out_ref):
    # ---- softmax numerator (f32); denominator folded in after the matmul ----
    logits = logits_ref[...].astype(jnp.float32)               # (tn, C)
    m = jnp.max(logits, axis=-1, keepdims=True)
    e = jnp.exp(logits - m)                                    # (tn, C)
    row_sum = jnp.sum(e, axis=-1, keepdims=True)               # (tn, 1)
    # Fold the negation and class weight into the (tn, 1) reciprocal so the only
    # full-size class op is the single multiply below.
    neg_wc_inv = pl.reciprocal(row_sum, approx=True) * (-float(cost_class_w))

    # ---- cost_class = -(softmax(logits) @ positive_map.T) (MXU bf16 / f32 acc) ----
    unnorm = jnp.dot(e.astype(jnp.bfloat16), posmap_t_ref[...],
                     preferred_element_type=jnp.float32)       # (tn, T_pad)
    cost = unnorm * neg_wc_inv                                 # weighted class cost

    boxes = boxes_ref[...].astype(jnp.float32)                 # (tn, 4) cxcywh
    tgt = tgt_t_ref[...]                                       # (4, T_pad) f32 cxcywh

    cx_s, cy_s = boxes[:, 0:1], boxes[:, 1:2]                  # (tn, 1)
    w_s, h_s = boxes[:, 2:3], boxes[:, 3:4]
    cx_t, cy_t = tgt[0:1, :], tgt[1:2, :]                      # (1, T_pad)
    w_t, h_t = tgt[2:3, :], tgt[3:4, :]

    # Small-shape precomputes (per-row / per-column only).
    hw_s, hh_s = 0.5 * w_s, 0.5 * h_s                          # (tn, 1)
    hw_t, hh_t = 0.5 * w_t, 0.5 * h_t                          # (1, T_pad)
    area_s = w_s * h_s                                         # (tn, 1)
    area_t = w_t * h_t                                         # (1, T_pad)

    # ---- full-size abs diffs, shared by the L1 cost and the center-form IoU ----
    adx = jnp.abs(cx_s - cx_t)                                 # (tn, T_pad)
    ady = jnp.abs(cy_s - cy_t)
    adw = jnp.abs(w_s - w_t)
    adh = jnp.abs(h_s - h_t)
    bbox_l1 = adx + ady + adw + adh                            # cdist(., ., p=1)

    # ---- exact center-form IoU / enclosing box (requires w,h >= 0, as in the
    #      torchvision generalized_box_iou precondition) ----
    sum_hw = hw_s + hw_t                                       # (w_s + w_t) / 2
    sum_hh = hh_s + hh_t
    inter_w = jnp.maximum(jnp.minimum(sum_hw - adx, jnp.minimum(w_s, w_t)), 0.0)
    inter_h = jnp.maximum(jnp.minimum(sum_hh - ady, jnp.minimum(h_s, h_t)), 0.0)
    enc_w = jnp.maximum(sum_hw + adx, jnp.maximum(w_s, w_t))
    enc_h = jnp.maximum(sum_hh + ady, jnp.maximum(h_s, h_t))

    inter = inter_w * inter_h                                  # (tn, T_pad)
    union = (area_s + area_t) - inter
    enc_area = enc_w * enc_h

    # Exact reciprocals here (only 2 full-size ops) so near-tied assignments are
    # not perturbed; padded dummy boxes are valid so both denominators are > 0.
    r_u = pl.reciprocal(union)
    r_e = pl.reciprocal(enc_area)
    # -giou = 1 - inter/union - union/enc_area
    neg_giou = 1.0 - (inter * r_u + union * r_e)

    if float(cost_bbox_w) == 1.0:
        cost = cost + bbox_l1
    else:
        cost = cost + float(cost_bbox_w) * bbox_l1
    if float(cost_giou_w) == 1.0:
        cost = cost + neg_giou
    else:
        cost = cost + float(cost_giou_w) * neg_giou

    out_ref[...] = cost


def cost_matrix_pallas(pred_logics, pred_boxes, tgt_bbox, positive_map,
                       cost_class=1.0, cost_bbox=1.0, cost_giou=1.0,
                       tile_n=None):
    """pred_logics (N, C), pred_boxes (N, 4), tgt_bbox (T, 4), positive_map (T, C)."""
    N, C = pred_logics.shape
    T = tgt_bbox.shape[0]

    # Lane-dense output / full MXU columns: pad T up to a multiple of 128.
    T_pad = _round_up(max(T, 1), 128)

    # Row tile: multiple of 8 (sublanes).
    if tile_n is None:
        tile_n = min(512, _round_up(N, 8))
        # Keep the (tile_n, T_pad) f32 working set (~15 live intermediates +
        # double-buffered output) a few MiB even for large production T so it
        # fits v7x's 32 MiB scoped-VMEM default without overrides.
        tile_n = min(tile_n, max(64, ((1 << 20) // (T_pad * 4)) // 8 * 8))
        # v7x megacore: guarantee >= 2 grid steps so both TensorCores get work
        # (no-op on single-TC v5e / v6e).
        if N > 8 and pl.cdiv(N, tile_n) < 2:
            tile_n = _round_up(pl.cdiv(N, 2), 8)
    tile_n = max(8, _round_up(tile_n, 8))
    N_pad = _round_up(N, tile_n)

    # Keep logits and boxes in their native dtype over the DMA (cast in-kernel).
    logits = pred_logics
    boxes = pred_boxes
    if N_pad != N:
        logits = jnp.pad(logits, ((0, N_pad - N), (0, 0)))
        pad_box = jnp.tile(jnp.asarray([[0.5, 0.5, 1.0, 1.0]], boxes.dtype),
                           (N_pad - N, 1))
        boxes = jnp.concatenate([boxes, pad_box], axis=0)

    tgt = tgt_bbox.astype(jnp.float32)
    posmap = positive_map
    if T_pad != T:
        pad_tgt = jnp.tile(jnp.asarray([[0.5, 0.5, 1.0, 1.0]], tgt.dtype),
                           (T_pad - T, 1))
        tgt = jnp.concatenate([tgt, pad_tgt], axis=0)
        posmap = jnp.pad(posmap, ((0, T_pad - T), (0, 0)))

    tgt_t = jnp.transpose(tgt)                                  # (4, T_pad) f32
    # Cast the grid-invariant resident block to bf16 ONCE here (the MXU sees bf16
    # anyway); avoids a per-grid-step astype in the kernel and halves its VMEM.
    posmap_t = jnp.transpose(posmap).astype(jnp.bfloat16)       # (C, T_pad) bf16

    kernel = functools.partial(_cost_matrix_kernel,
                               float(cost_class), float(cost_bbox), float(cost_giou))

    grid = (N_pad // tile_n,)
    itemsize = lambda a: int(np.dtype(a.dtype).itemsize)
    cost_est = pl.CostEstimate(
        flops=int(2 * N_pad * C * T_pad + 30 * N_pad * T_pad),
        transcendentals=int(N_pad * C + 2 * N_pad * T_pad + N_pad),
        bytes_accessed=int(logits.size * itemsize(logits)
                           + boxes.size * itemsize(boxes)
                           + tgt_t.size * itemsize(tgt_t)
                           + posmap_t.size * itemsize(posmap_t)
                           + N_pad * T_pad * 4),
    )

    out = pl.pallas_call(
        kernel,
        out_shape=jax.ShapeDtypeStruct((N_pad, T_pad), jnp.float32),
        grid=grid,
        in_specs=[
            pl.BlockSpec((tile_n, C), lambda i: (i, 0)),        # logits tile
            pl.BlockSpec((tile_n, 4), lambda i: (i, 0)),        # boxes tile
            pl.BlockSpec((4, T_pad), lambda i: (0, 0)),         # tgt (resident)
            pl.BlockSpec((C, T_pad), lambda i: (0, 0)),         # posmap bf16 (resident)
        ],
        out_specs=pl.BlockSpec((tile_n, T_pad), lambda i: (i, 0)),
        compiler_params=pltpu.CompilerParams(
            dimension_semantics=("parallel",)),
        cost_estimate=cost_est,
    )(logits, boxes, tgt_t, posmap_t)

    return out[:N, :T]


def _linear_sum_assignment_bruteforce(cost):
    # TODO(synk): Hungarian (scipy.optimize.linear_sum_assignment) has no Pallas
    # equivalent; small exact brute force on host for Q >= n (toy sizes only).
    cost = np.asarray(cost, dtype=np.float64)
    Q, n = cost.shape
    best_cost, best_perm = None, None
    for perm in itertools.permutations(range(Q), n):
        s = sum(cost[perm[j], j] for j in range(n))
        if best_cost is None or s < best_cost:
            best_cost, best_perm = s, perm
    pairs = sorted(zip(best_perm, range(n)))
    rows = np.array([p[0] for p in pairs], dtype=np.int64)
    cols = np.array([p[1] for p in pairs], dtype=np.int64)
    return rows, cols


class HungarianMatcher:
    def __init__(self, cost_class=1.0, cost_bbox=1.0, cost_giou=1.0):
        assert cost_class != 0 or cost_bbox != 0 or cost_giou != 0, "all costs cant be 0"
        self.cost_class = cost_class
        self.cost_bbox = cost_bbox
        self.cost_giou = cost_giou

    def __call__(self, object_detect_rst, targets):
        pred_boxes = object_detect_rst["pred_boxes"]    # (B, Q, 4)
        pred_logics = object_detect_rst["pred_logics"]  # (B, Q, C)
        B, Q = pred_boxes.shape[:2]

        tgt_bbox = jnp.concatenate(targets["boxes"], axis=0)   # (T, 4)
        positive_map = targets["positive_map"]                  # (T, C)
        assert tgt_bbox.shape[0] == positive_map.shape[0]

        cost = cost_matrix_pallas(
            pred_logics.reshape(B * Q, -1),
            pred_boxes.reshape(B * Q, 4),
            tgt_bbox, positive_map,
            self.cost_class, self.cost_bbox, self.cost_giou)
        cost = jax.block_until_ready(cost)
        cost_np = np.asarray(cost).reshape(B, Q, -1)

        bbox_sizes = [int(b.shape[0]) for b in targets["boxes"]]
        indices, start = [], 0
        for i, n in enumerate(bbox_sizes):
            c = cost_np[i, :, start:start + n]
            indices.append(_linear_sum_assignment_bruteforce(c))
            start += n
        return indices


def _reference_cost_matrix(logits, boxes, tgt_bbox, positive_map, wc, wb, wg):
    """Pure numpy reference of the PyTorch forward (cost matrix part)."""
    logits = np.asarray(logits, np.float64)
    boxes = np.asarray(boxes, np.float64)
    tgt = np.asarray(tgt_bbox, np.float64)
    pm = np.asarray(positive_map, np.float64)
    e = np.exp(logits - logits.max(-1, keepdims=True))
    prob = e / e.sum(-1, keepdims=True)
    cost_class = -(prob[:, None, :] * pm[None, :, :]).sum(-1)
    cost_bbox = np.abs(boxes[:, None, :] - tgt[None, :, :]).sum(-1)

    def xyxy(b):
        cx, cy, w, h = b[:, 0], b[:, 1], b[:, 2], b[:, 3]
        return np.stack([cx - w / 2, cy - h / 2, cx + w / 2, cy + h / 2], -1)

    b1, b2 = xyxy(boxes), xyxy(tgt)
    a1 = (b1[:, 2] - b1[:, 0]) * (b1[:, 3] - b1[:, 1])
    a2 = (b2[:, 2] - b2[:, 0]) * (b2[:, 3] - b2[:, 1])
    lt = np.maximum(b1[:, None, :2], b2[None, :, :2])
    rb = np.minimum(b1[:, None, 2:], b2[None, :, 2:])
    wh = np.clip(rb - lt, 0, None)
    inter = wh[..., 0] * wh[..., 1]
    union = a1[:, None] + a2[None, :] - inter
    iou = inter / union
    ltc = np.minimum(b1[:, None, :2], b2[None, :, :2])
    rbc = np.maximum(b1[:, None, 2:], b2[None, :, 2:])
    whc = np.clip(rbc - ltc, 0, None)
    areac = whc[..., 0] * whc[..., 1]
    giou = iou - (areac - union) / areac
    return wb * cost_bbox + wc * cost_class + wg * (-giou)


if __name__ == "__main__":
    key = jax.random.PRNGKey(0)
    B, Q, C = 2, 8, 32           # batch, query_nums, class/token dim
    sizes = [3, 2]               # targets per batch element -> T = 5
    T = sum(sizes)

    k1, k2, k3, k4 = jax.random.split(key, 4)
    pred_logics = jax.random.normal(k1, (B, Q, C), dtype=jnp.float32)
    centers = jax.random.uniform(k2, (B, Q, 2), minval=0.2, maxval=0.8)
    whs = jax.random.uniform(k2, (B, Q, 2), minval=0.1, maxval=0.4)
    pred_boxes = jnp.concatenate([centers, whs], axis=-1)       # (B, Q, 4) cxcywh

    t_centers = jax.random.uniform(k3, (T, 2), minval=0.2, maxval=0.8)
    t_whs = jax.random.uniform(k3, (T, 2), minval=0.1, maxval=0.4)
    tgt_all = jnp.concatenate([t_centers, t_whs], axis=-1)      # (T, 4) cxcywh
    tgt_boxes = [tgt_all[:sizes[0]], tgt_all[sizes[0]:]]
    positive_map = jax.random.uniform(k4, (T, C), dtype=jnp.float32)

    targets = {"boxes": tgt_boxes, "positive_map": positive_map}
    object_detect_rst = {"pred_boxes": pred_boxes, "pred_logics": pred_logics}

    matcher = HungarianMatcher(cost_class=1.0, cost_bbox=1.0, cost_giou=1.0)

    # Run the Pallas cost-matrix kernel directly and verify against numpy ref.
    cost = cost_matrix_pallas(pred_logics.reshape(B * Q, C),
                              pred_boxes.reshape(B * Q, 4),
                              tgt_all, positive_map)
    cost = jax.block_until_ready(cost)
    ref = _reference_cost_matrix(np.asarray(pred_logics).reshape(B * Q, C),
                                 np.asarray(pred_boxes).reshape(B * Q, 4),
                                 np.asarray(tgt_all), np.asarray(positive_map),
                                 1.0, 1.0, 1.0)
    # bf16 MXU inputs + approx softmax reciprocal -> ~1e-3..1e-2 relative error,
    # harmless for the matching cost; tolerance relaxed accordingly.
    np.testing.assert_allclose(np.asarray(cost), ref, rtol=2e-2, atol=2e-2)

    # Full forward: cost matrix (Pallas) + host-side assignment.
    indices = matcher(object_detect_rst, targets)
    assert len(indices) == B
    for (i_idx, j_idx), n in zip(indices, sizes):
        assert i_idx.shape == (n,) and j_idx.shape == (n,)
        assert i_idx.dtype == np.int64 and j_idx.dtype == np.int64

    print("KERNEL_OK")
</pallas_src>

<mosaic_0001>
module attributes {stable_mosaic.version = 11 : i64} {
  func.func @_cost_matrix_kernel(%arg0: i32, %arg1: memref<8x32xf32, #tpu.memory_space<vmem>>, %arg2: memref<8x4xf32, #tpu.memory_space<vmem>>, %arg3: memref<4x128xf32, #tpu.memory_space<vmem>>, %arg4: memref<32x128xbf16, #tpu.memory_space<vmem>>, %arg5: memref<8x128xf32, #tpu.memory_space<vmem>>) attributes {dimension_semantics = [#tpu.dimension_semantics<parallel>], iteration_bounds = array<i64: 2>, scalar_prefetch = 0 : i64, scratch_operands = 0 : i64, tpu.core_type = #tpu.core_type<tc>, window_params = [{transform_indices = @transform_0, window_bounds = array<i64: 8, 32>}, {transform_indices = @transform_1, window_bounds = array<i64: 8, 4>}, {pipeline_mode = #tpu.pipeline_mode<synchronous>, transform_indices = @transform_2, window_bounds = array<i64: 4, 128>}, {pipeline_mode = #tpu.pipeline_mode<synchronous>, transform_indices = @transform_3, window_bounds = array<i64: 32, 128>}, {transform_indices = @transform_4, window_bounds = array<i64: 8, 128>}]} {
    %c0 = arith.constant 0 : index
    %c0_0 = arith.constant 0 : index
    %0 = vector.load %arg1[%c0, %c0_0] : memref<8x32xf32, #tpu.memory_space<vmem>>, vector<8x32xf32>
    %cst = arith.constant dense<0xFF800000> : vector<8xf32>
    %1 = vector.multi_reduction <maximumf>, %0, %cst [1] : vector<8x32xf32> to vector<8xf32>
    %2 = vector.shape_cast %1 : vector<8xf32> to vector<8x1xf32>
    %3 = vector.broadcast %2 : vector<8x1xf32> to vector<8x32xf32>
    %4 = arith.subf %0, %3 : vector<8x32xf32>
    %5 = math.exp %4 : vector<8x32xf32>
    %cst_1 = arith.constant dense<0.000000e+00> : vector<8xf32>
    %6 = vector.multi_reduction <add>, %5, %cst_1 [1] : vector<8x32xf32> to vector<8xf32>
    %7 = vector.shape_cast %6 : vector<8xf32> to vector<8x1xf32>
    %8 = tpu.reciprocal %7 {approx = true} : vector<8x1xf32> -> vector<8x1xf32>
    %cst_2 = arith.constant -1.000000e+00 : f32
    %9 = vector.broadcast %cst_2 : f32 to vector<8x1xf32>
    %10 = arith.mulf %8, %9 : vector<8x1xf32>
    %11 = arith.truncf %5 : vector<8x32xf32> to vector<8x32xbf16>
    %c0_3 = arith.constant 0 : index
    %c0_4 = arith.constant 0 : index
    %12 = vector.load %arg4[%c0_3, %c0_4] : memref<32x128xbf16, #tpu.memory_space<vmem>>, vector<32x128xbf16>
    %cst_5 = arith.constant dense<0.000000e+00> : vector<8x128xf32>
    %13 = tpu.matmul %11, %12, %cst_5 {dimension_numbers = #tpu.dot_dimension_numbers<[1], [0], [0], [1], [0, 0, 1, 1], [], []>} : vector<8x32xbf16>, vector<32x128xbf16>, vector<8x128xf32> -> vector<8x128xf32>
    %14 = vector.broadcast %10 : vector<8x1xf32> to vector<8x128xf32>
    %15 = arith.mulf %13, %14 : vector<8x128xf32>
    %c0_6 = arith.constant 0 : index
    %c0_7 = arith.constant 0 : index
    %16 = vector.load %arg2[%c0_6, %c0_7] : memref<8x4xf32, #tpu.memory_space<vmem>>, vector<8x4xf32>
    %c0_8 = arith.constant 0 : index
    %c0_9 = arith.constant 0 : index
    %17 = vector.load %arg3[%c0_8, %c0_9] : memref<4x128xf32, #tpu.memory_space<vmem>>, vector<4x128xf32>
    %18 = vector.extract_strided_slice %16 {offsets = [0, 0], sizes = [8, 1], strides = [1, 1]} : vector<8x4xf32> to vector<8x1xf32>
    %19 = vector.extract_strided_slice %16 {offsets = [0, 1], sizes = [8, 1], strides = [1, 1]} : vector<8x4xf32> to vector<8x1xf32>
    %20 = vector.extract_strided_slice %16 {offsets = [0, 2], sizes = [8, 1], strides = [1, 1]} : vector<8x4xf32> to vector<8x1xf32>
    %21 = vector.extract_strided_slice %16 {offsets = [0, 3], sizes = [8, 1], strides = [1, 1]} : vector<8x4xf32> to vector<8x1xf32>
    %22 = vector.extract_strided_slice %17 {offsets = [0, 0], sizes = [1, 128], strides = [1, 1]} : vector<4x128xf32> to vector<1x128xf32>
    %23 = vector.extract_strided_slice %17 {offsets = [1, 0], sizes = [1, 128], strides = [1, 1]} : vector<4x128xf32> to vector<1x128xf32>
    %24 = vector.extract_strided_slice %17 {offsets = [2, 0], sizes = [1, 128], strides = [1, 1]} : vector<4x128xf32> to vector<1x128xf32>
    %25 = vector.extract_strided_slice %17 {offsets = [3, 0], sizes = [1, 128], strides = [1, 1]} : vector<4x128xf32> to vector<1x128xf32>
    %cst_10 = arith.constant 5.000000e-01 : f32
    %26 = vector.broadcast %cst_10 : f32 to vector<8x1xf32>
    %27 = arith.mulf %26, %20 : vector<8x1xf32>
    %cst_11 = arith.constant 5.000000e-01 : f32
    %28 = vector.broadcast %cst_11 : f32 to vector<8x1xf32>
    %29 = arith.mulf %28, %21 : vector<8x1xf32>
    %cst_12 = arith.constant 5.000000e-01 : f32
    %30 = vector.broadcast %cst_12 : f32 to vector<1x128xf32>
    %31 = arith.mulf %30, %24 : vector<1x128xf32>
    %cst_13 = arith.constant 5.000000e-01 : f32
    %32 = vector.broadcast %cst_13 : f32 to vector<1x128xf32>
    %33 = arith.mulf %32, %25 : vector<1x128xf32>
    %34 = arith.mulf %20, %21 : vector<8x1xf32>
    %35 = arith.mulf %24, %25 : vector<1x128xf32>
    %36 = vector.broadcast %18 : vector<8x1xf32> to vector<8x128xf32>
    %37 = vector.broadcast %22 : vector<1x128xf32> to vector<8x128xf32>
    %38 = arith.subf %36, %37 : vector<8x128xf32>
    %39 = math.absf %38 : vector<8x128xf32>
    %40 = vector.broadcast %19 : vector<8x1xf32> to vector<8x128xf32>
    %41 = vector.broadcast %23 : vector<1x128xf32> to vector<8x128xf32>
    %42 = arith.subf %40, %41 : vector<8x128xf32>
    %43 = math.absf %42 : vector<8x128xf32>
    %44 = vector.broadcast %20 : vector<8x1xf32> to vector<8x128xf32>
    %45 = vector.broadcast %24 : vector<1x128xf32> to vector<8x128xf32>
    %46 = arith.subf %44, %45 : vector<8x128xf32>
    %47 = math.absf %46 : vector<8x128xf32>
    %48 = vector.broadcast %21 : vector<8x1xf32> to vector<8x128xf32>
    %49 = vector.broadcast %25 : vector<1x128xf32> to vector<8x128xf32>
    %50 = arith.subf %48, %49 : vector<8x128xf32>
    %51 = math.absf %50 : vector<8x128xf32>
    %52 = arith.addf %39, %43 : vector<8x128xf32>
    %53 = arith.addf %52, %47 : vector<8x128xf32>
    %54 = arith.addf %53, %51 : vector<8x128xf32>
    %55 = vector.broadcast %27 : vector<8x1xf32> to vector<8x128xf32>
    %56 = vector.broadcast %31 : vector<1x128xf32> to vector<8x128xf32>
    %57 = arith.addf %55, %56 : vector<8x128xf32>
    %58 = vector.broadcast %29 : vector<8x1xf32> to vector<8x128xf32>
    %59 = vector.broadcast %33 : vector<1x128xf32> to vector<8x128xf32>
    %60 = arith.addf %58, %59 : vector<8x128xf32>
    %61 = arith.subf %57, %39 : vector<8x128xf32>
    %62 = vector.broadcast %20 : vector<8x1xf32> to vector<8x128xf32>
    %63 = vector.broadcast %24 : vector<1x128xf32> to vector<8x128xf32>
    %64 = arith.minimumf %62, %63 : vector<8x128xf32>
    %65 = arith.minimumf %61, %64 : vector<8x128xf32>
    %cst_14 = arith.constant 0.000000e+00 : f32
    %66 = vector.broadcast %cst_14 : f32 to vector<8x128xf32>
    %67 = arith.maximumf %65, %66 : vector<8x128xf32>
    %68 = arith.subf %60, %43 : vector<8x128xf32>
    %69 = vector.broadcast %21 : vector<8x1xf32> to vector<8x128xf32>
    %70 = vector.broadcast %25 : vector<1x128xf32> to vector<8x128xf32>
    %71 = arith.minimumf %69, %70 : vector<8x128xf32>
    %72 = arith.minimumf %68, %71 : vector<8x128xf32>
    %cst_15 = arith.constant 0.000000e+00 : f32
    %73 = vector.broadcast %cst_15 : f32 to vector<8x128xf32>
    %74 = arith.maximumf %72, %73 : vector<8x128xf32>
    %75 = arith.addf %57, %39 : vector<8x128xf32>
    %76 = vector.broadcast %20 : vector<8x1xf32> to vector<8x128xf32>
    %77 = vector.broadcast %24 : vector<1x128xf32> to vector<8x128xf32>
    %78 = arith.maximumf %76, %77 : vector<8x128xf32>
    %79 = arith.maximumf %75, %78 : vector<8x128xf32>
    %80 = arith.addf %60, %43 : vector<8x128xf32>
    %81 = vector.broadcast %21 : vector<8x1xf32> to vector<8x128xf32>
    %82 = vector.broadcast %25 : vector<1x128xf32> to vector<8x128xf32>
    %83 = arith.maximumf %81, %82 : vector<8x128xf32>
    %84 = arith.maximumf %80, %83 : vector<8x128xf32>
    %85 = arith.mulf %67, %74 : vector<8x128xf32>
    %86 = vector.broadcast %34 : vector<8x1xf32> to vector<8x128xf32>
    %87 = vector.broadcast %35 : vector<1x128xf32> to vector<8x128xf32>
    %88 = arith.addf %86, %87 : vector<8x128xf32>
    %89 = arith.subf %88, %85 : vector<8x128xf32>
    %90 = arith.mulf %79, %84 : vector<8x128xf32>
    %91 = tpu.reciprocal %89 : vector<8x128xf32> -> vector<8x128xf32>
    %92 = tpu.reciprocal %90 : vector<8x128xf32> -> vector<8x128xf32>
    %93 = arith.mulf %85, %91 : vector<8x128xf32>
    %94 = arith.mulf %89, %92 : vector<8x128xf32>
    %95 = arith.addf %93, %94 : vector<8x128xf32>
    %cst_16 = arith.constant 1.000000e+00 : f32
    %96 = vector.broadcast %cst_16 : f32 to vector<8x128xf32>
    %97 = arith.subf %96, %95 : vector<8x128xf32>
    %98 = arith.addf %15, %54 : vector<8x128xf32>
    %99 = arith.addf %98, %97 : vector<8x128xf32>
    %c0_17 = arith.constant 0 : index
    %c0_18 = arith.constant 0 : index
    %100 = vector.load %arg5[%c0_17, %c0_18] : memref<8x128xf32, #tpu.memory_space<vmem>>, vector<8x128xf32>
    tpu.vector_store %arg5[%c0_17, %c0_18], %99 {strides = array<i32>} : memref<8x128xf32, #tpu.memory_space<vmem>>, vector<8x128xf32>,
    return
  }
  func.func @transform_0(%arg0: i32) -> (i32, i32) {
    %c0_i32 = arith.constant 0 : i32
    %c0_i32_0 = arith.constant 0 : i32
    return %arg0, %c0_i32 : i32, i32
  }
  func.func @transform_1(%arg0: i32) -> (i32, i32) {
    %c0_i32 = arith.constant 0 : i32
    %c0_i32_0 = arith.constant 0 : i32
    return %arg0, %c0_i32 : i32, i32
  }
  func.func @transform_2(%arg0: i32) -> (i32, i32) {
    %c0_i32 = arith.constant 0 : i32
    %c0_i32_0 = arith.constant 0 : i32
    %c0_i32_1 = arith.constant 0 : i32
    return %c0_i32, %c0_i32_0 : i32, i32
  }
  func.func @transform_3(%arg0: i32) -> (i32, i32) {
    %c0_i32 = arith.constant 0 : i32
    %c0_i32_0 = arith.constant 0 : i32
    %c0_i32_1 = arith.constant 0 : i32
    return %c0_i32, %c0_i32_0 : i32, i32
  }
  func.func @transform_4(%arg0: i32) -> (i32, i32) {
    %c0_i32 = arith.constant 0 : i32
    %c0_i32_0 = arith.constant 0 : i32
    return %arg0, %c0_i32 : i32, i32
  }
}

</mosaic_0001>

<bundles_post_ra>
// kernel: tpu_custom_call.1
= control target key start
LH: loop header
LB: loop body
LE: loop exit
PB: predicated region body
PF: predicated region fallthrough
CT: control target
= control target key end

     0   :  { %9 = vsyncpa [#allocation3], 0  ;;  %s887_s0 = inlined_call_operand.vmem [shape: f32[16,32], index: 0, kind: input, shape index: {}]   ;;  %s888_s1 = inlined_call_operand.vmem [shape: f32[16,4], index: 1, kind: input, shape index: {}]   ;;  %s889_s2 = inlined_call_operand.vmem [shape: f32[4,128], index: 2, kind: input, shape index: {}]   ;;  %s890_s3 = inlined_call_operand.hbm [shape: bf16[32,128], index: 3, kind: input, shape index: {}]   ;;  %s891_s4 = inlined_call_operand.hbm [shape: f32[16,128], index: 4, kind: output, shape index: {}]  }
   0x1   :  { %10 = vsyncpa [#allocation4], 0 }
   0x2   :  { %12 = vsyncpa [#allocation4 + $0x1], 0  ;;  %s743_s15 = smov 0   ;;  %s745_s16 = smov 0  }
   0x3   :  { %s747_s17 = smov 0   ;;  %s749_s18 = smov 0  }
   0x4 LB: > { %s764_s19 = sadd.s32 4294967295, %s705_s18   ;;  %s508_s20 = sadd.s32 4294967294, %s705_s18   ;;  %s705_s18 = sphi %s749_s18, %s907_s18   ;;  %s701_s17 = sphi %s747_s17, %s906_s17   ;;  %s697_s16 = sphi %s745_s16, %s905_s16   ;;  %s693_s15 = sphi %s743_s15, %s904_s15  }
   0x5   : > { %s768_s21 = sadd.s32 1, %s705_s18   ;;  %s119_s22 = sadd.s32 1, %s701_s17 }
   0x6   : > { %s116_s23 = ssub.s32 %s705_s18, %s768_s21  ;;  %p129_p0 = scmp.ne.s32.totalorder %s701_s17, %s697_s16 }
   0x7   : > { %p117_p1 = scmp.eq.s32.totalorder %s116_s23, 0  ;;  %p130_p2 = scmp.eq.s32.totalorder %s764_s19, 1 }
   0x8   : > { %p135_p3 = scmp.ne.s32.totalorder %s697_s16, %s693_s15  ;;  %p136_p4 = scmp.eq.s32.totalorder %s508_s20, 1 }
   0x9   : > { %s779_s24 = scalar_select %p117_p1, %s701_s17, %s119_s22  }
   0xa   : > { %p781_p5 = por %p130_p2, %p129_p0  ;;  %p785_p6 = por %p136_p4, %p135_p3 }
   0xb   : > { %p509_p7 = scmp.ge.s32.totalorder %s705_s18, 1  ;;  %p143_p8 = scmp.lt.s32.totalorder %s705_s18, 3 }
   0xc   : > { %s895_s25 = scalar_select %p781_p5, 1, 0 }
   0xd   : > { %s896_s26 = scalar_select %p785_p6, 1, 0 }
   0xe   : > { %p892_p9 = scmp.eq.s32.totalorder %s764_s19, 0  ;;  %p792_p10 = pnand %p509_p7, %p143_p8 }
   0xf   : > { %s707_s28 = smov [#allocation2]   ;;  %s611_s7 = scalar_lea.hbm %s890_s3, 256 }
  0x10   : > { %s897_s27 = scalar_select %p792_p10, 1, 0 }
  0x11   : > { %s158_s29 = sshll.u32 %s707_s28, 4  ;;  %p541_p11 = pneg %p792_p10  ;;  %s159_s29 = int_to_ptr.vmem [resolvable:$true] %s158_s29 }
  0x12   : > { %p612_p13 = scmp.ne.s32.totalorder %s890_s3, %s611_s7  ;;  %p618_p3 = scmp.lt.u32.totalorder %s611_s7, %s890_s3 }
  0x13   : > { %p800_p12 = pnand %p892_p9, %p541_p11 }
  0x15   : > { %p613_p0 = pneg %p800_p12 }
  0x17   : > { %p614_p1 = pnand %p613_p0, %p612_p13 }
  0x19   : > { %p615_p2 = pneg %p614_p1 }
  0x1b   : > { %p620_p4 = pnand %p618_p3, %p615_p2 }
  0x1d   : > { %623 = shalt.err (!%p620_p4)
}
  0x1e   : > { %s624_s12 = scalar_lea.vmem %s159_s29, 256  ;;  %p632_p9 = scmp.lt.s32.totalorder %s159_s29, %s159_s29 }
  0x1f   : > { %p625_p7 = scmp.ne.s32.totalorder %s159_s29, %s624_s12  ;;  %p633_p6 = scmp.lt.s32.totalorder %s624_s12, %s624_s12 }
  0x21   : > { %p627_p8 = pnand %p625_p7, %p613_p0  ;;  %p634_p5 = por %p633_p6, %p632_p9 }
  0x23   : > { %p628_p11 = pneg %p627_p8 }
  0x25   : > { %p635_p10 = pnand %p634_p5, %p628_p11 }
  0x27   : > { %638 = shalt.err (!%p635_p10)
}
  0x28   : > { %s708_s13 = smov 64   ;;  %s709_s14 = smov 4  }
  0x29   : > { %544 = dma.hbm_to_vmem [thread:$0]  (!%p800_p12), %s890_s3, 256, %s159_s29, [#allocation3], %s708_s13, %s708_s13, %s709_s14  }
  0x2a   : > { %p899_p13 = scmp.ne.s32.totalorder %s897_s27, 0 }
  0x2b   : > { %p900_p1 = scmp.eq.s32.totalorder (!%p899_p13), %s764_s19, 0 }
  0x2c   : > { %188 = sbr.rel (%p899_p13) target bundleno = 451 (0x1c3), region = 36 }
  0x33   : > { %684 = dma.done.wait (%p900_p1), [#allocation3], 256   ;;  %p901_p0 = pmov %p900_p1 }
  0x34   : > { %p217_p5 = scmp.lt.s32.totalorder %s764_s19, 1  ;;  %v710_v0 = vmov 0   ;;  %v711_v1 = vmov 2   ;;  %vm227_vm0 = vcmask 261120   ;;  %v712_v5 = vmov 1   ;;  %v601_v8 = vld [vmem:[#allocation2] sm:$0xff]  }
  0x35   : > { %686 = vsyncadd (%p901_p0), [#allocation3], 4294967040  ;;  %594 = vset.pattern.permute.xlu1 %v710_v0  ;;  %600 = vset.pattern.permute.xlu0 %v711_v1  ;;  %v713_v7 = vmov 3   ;;  %v714_v9 = vmov 0.0   ;;  %v602_v10 = vld [vmem:[#allocation2 + $0x8] sm:$0xff]   ;;  %vm715_vm1 = vmmov 0   ;;  %v317_v21 = vlaneseq }
  0x36   : > { %s218_s23 = scalar_select %p217_p5, %s764_s19, 1  ;;  %527 = vmatprep.subr.bf16.mxu0 %v714_v9  ;;  %531 = vmatprep.mubr.msk.bf16.mxu0 %vm715_vm1, %v714_v9  ;;  %v301_v24 = vld [vmem:[%s889_s2] sm:$0xf] }
  0x37   : > { %528 = vmatpush3.bf16.msra.mxu0 %v601_v8  ;;  %s716_s8 = smov 127   ;;  %v318_v23 = vshrl.u32 %v317_v21, 7  ;;  %v303_v28 = vmul.f32 0.5, %v301_v24  ;;  %v310_v45 = vrot.slane %v301_v24, 1  ;;  %s214_s11 = sand.u32 1, %s697_s16  }
  0x38   : > { %s515_s28 = sshll.u32 %s218_s23, 3  ;;  %529 = vmatprep.subr.bf16.mxu0 %v714_v9  ;;  %s514_s12 = sshll.u32 %s214_s11, 3 }
  0x39   : > { %s220_s27 = scalar_lea.vmem %s887_s0, %s515_s28  ;;  %s224_s7 = scalar_lea.vmem %s888_s1, %s515_s28  ;;  %v319_v25 = vsub.s32 0, %v318_v23  ;;  %v329_v26 = vsub.s32 1, %v318_v23  ;;  %v339_v31 = vsub.s32 2, %v318_v23  ;;  %v349_v32 = vsub.s32 3, %v318_v23 }
  0x3a   : > { %v226_v2 = vld [vmem:[%s220_s27] sm:$0xff]  ;;  %v312_v52 = vmul.f32 %v310_v45, %v301_v24  ;;  %s521_s13 = sshll.u32 %s764_s19, 7  ;;  %s216_s14 = scalar_lea.vmem [#allocation5], %s514_s12 }
  0x3b   : > { %v300_v3 = vld [vmem:[%s224_s7] sm:$0xff]  ;;  %v228_v4 = vsel %vm227_vm0, %v226_v2, -inf  ;;  %530 = vmatpush3.bf16.msra.mxu0 %v602_v10  ;;  %v320_v29 = vrot.slane %v301_v24, %v319_v25  ;;  %v330_v30 = vrot.slane %v301_v24, %v329_v26  ;;  %v364_v36 = vrot.slane %v303_v28, %v339_v31  ;;  %s425_s20 = sshll.u32 %s216_s14, 4  ;;  %s845_s28 = scalar_lea.hbm %s891_s4, %s521_s13  ;;  %s847_s20 = int_to_ptr.vmem [resolvable:$true] %s425_s20 }
  0x3c   : > { %314 = vperm.xlu1 %594, %v300_v3   ;;  %229 = vmax.xlane.f32.xlu0 %v228_v4  ;;  %v302_v6 = vmul.f32 0.5, %v300_v3  ;;  %v373_v37 = vrot.slane %v303_v28, %v349_v32  ;;  %v350_v38 = vrot.slane %v301_v24, %v349_v32  ;;  %v340_v39 = vrot.slane %v301_v24, %v339_v31  ;;  %s412_s30 = scalar_lea.sflag [#allocation4], %s214_s11  ;;  %s639_s29 = scalar_lea.vmem %s847_s20, 128 }
  0x3d   : > { %v398_v59 = vrot.slane %v312_v52, %v339_v31  ;;  %p640_p6 = scmp.ne.s32.totalorder %s847_s20, %s639_s29  ;;  %p902_p9 = scmp.ne.s32.totalorder %s895_s25, 0 }
  0x3e   : > { %s717_s19 = smov [#allocation5]  }
  0x3f   : > { %p641_p10 = pnand %p640_p6, %p902_p9  ;;  %s643_s27 = sshll.u32 %s717_s19, 4  ;;  %s644_s27 = int_to_ptr.vmem [resolvable:$false] %s643_s27 }
  0x40   : > { %595 = vset.pattern.permute.xlu1 %v712_v5  ;;  %s645_s5 = scalar_lea.vmem %s644_s27, 256  ;;  %p646_p2 = scmp.lt.s32.totalorder %s847_s20, %s644_s27 }
  0x41   : > { %324 = vperm.xlu1 %595, %v300_v3   ;;  %p642_p12 = pneg %p641_p10  ;;  %p647_p3 = scmp.lt.s32.totalorder %s645_s5, %s639_s29 }
  0x43   : > { %p648_p4 = por %p647_p3, %p646_p2 }
  0x45   : > { %596 = vset.pattern.permute.xlu1 %v711_v1  ;;  %p649_p7 = pnand %p648_p4, %p642_p12 }
  0x46   : > { %358 = vperm.xlu1 %596, %v302_v6  }
  0x4a   : > { %597 = vset.pattern.permute.xlu1 %v713_v7 }
  0x4b   : > { %367 = vperm.xlu1 %597, %v302_v6  }
  0x4f   : > { %598 = vset.pattern.permute.xlu1 %v711_v1 }
  0x50   : > { %334 = vperm.xlu1 %598, %v300_v3  }
  0x52   : > { %305 = vrot.lane.b32.xlu0 %v300_v3, %s716_s8 }
  0x54   : > { %599 = vset.pattern.permute.xlu1 %v713_v7 }
  0x55   : > { %344 = vperm.xlu1 %599, %v300_v3  }
  0xbb   : > { %v315_v19 = vpop.permute.xlu1 %314 }
  0xbc   : > { %v321_v34 = vsub.f32 %v315_v19, %v320_v29 }
  0xbe   : > { %v322_v40 = vand.u32 2147483647, %v321_v34 }
  0xc0   : > { %v325_v20 = vpop.permute.xlu1 %324 }
  0xc1   : > { %v331_v35 = vsub.f32 %v325_v20, %v330_v30 }
  0xc3   : > { %v332_v41 = vand.u32 2147483647, %v331_v35 }
  0xc5   : > { %v359_v22 = vpop.permute.xlu1 %358  ;;  %v353_v7 = vadd.f32 %v332_v41, %v322_v40 }
  0xc6   : > { %v365_v42 = vadd.f32 %v364_v36, %v359_v22 }
  0xc8   : > { %v375_v46 = vsub.f32 %v365_v42, %v322_v40  ;;  %v383_v53 = vadd.f32 %v365_v42, %v322_v40 }
  0xc9   : > { %v230_v11 = vpop.xlane.xlu0 %229 }
  0xca   : > { %v231_v12 = vsub.f32 %v226_v2, %v230_v11  ;;  %v368_v27 = vpop.permute.xlu1 %367 }
  0xcb   : > { %v374_v43 = vadd.f32 %v373_v37, %v368_v27 }
  0xcc   : > { %v232_v13 = vmul.f32 1.442695, %v231_v12 }
  0xcd   : > { %v306_v14 = vpop.permute.xlu0 %305  ;;  %v379_v47 = vsub.f32 %v374_v43, %v332_v41  ;;  %v386_v54 = vadd.f32 %v374_v43, %v332_v41 }
  0xce   : > { %603 = vpow2.f32 %v232_v13  ;;  %v308_v15 = vmul.f32 %v306_v14, %v300_v3 }
  0xcf   : > { %v335_v33 = vpop.permute.xlu1 %334 }
  0xd0   : > { %392 = vperm.xlu0 %600, %v308_v15   ;;  %v376_v48 = vmin.f32 %v335_v33, %v340_v39  ;;  %v384_v55 = vmax.f32 %v335_v33, %v340_v39  ;;  %v341_v4 = vsub.f32 %v335_v33, %v340_v39 }
  0xd2   : > { %v377_v50 = vmin.f32 %v375_v46, %v376_v48  ;;  %v385_v61 = vmax.f32 %v383_v53, %v384_v55  ;;  %v342_v8 = vand.u32 2147483647, %v341_v4 }
  0xd4   : > { %v345_v44 = vpop.permute.xlu1 %344  ;;  %v378_v57 = vmax.f32 %v377_v50, 0.0  ;;  %v354_v13 = vadd.f32 %v353_v7, %v342_v8 }
  0xd5   : > { %v380_v49 = vmin.f32 %v345_v44, %v350_v38  ;;  %v387_v56 = vmax.f32 %v345_v44, %v350_v38  ;;  %v351_v9 = vsub.f32 %v345_v44, %v350_v38 }
  0xd7   : > { %v381_v51 = vmin.f32 %v379_v47, %v380_v49  ;;  %v388_v62 = vmax.f32 %v386_v54, %v387_v56  ;;  %v352_v14 = vand.u32 2147483647, %v351_v9 }
  0xd8   : > { %v604_v16 = vpop.eup %603 }
  0xd9   : > { %v234_v17 = vsel %vm227_vm0, %v604_v16, 0.0  ;;  %v239_v18 = vpack.c.bf16 %v604_v16, %v604_v16  ;;  %v382_v58 = vmax.f32 %v381_v51, 0.0  ;;  %v401_v1 = vmul.f32 %v388_v62, %v385_v61 }
  0xda   : > { %235 = vadd.xlane.f32.xlu1 %v234_v17  ;;  %v355_v19 = vadd.f32 %v354_v13, %v352_v14 }
  0xdb   : > { %532 = vmatmul.mubr.msk.bf16.vlgmr.msra.gmra.mrb[0].mxu0 %vm227_vm0, %v239_v18  ;;  %v389_v63 = vmul.f32 %v382_v58, %v378_v57  ;;  %605 = vrcp.f32 %v401_v1 }
  0xe5   : > { %v606_v5 = vpop.eup %605 }
 0x14f   : > { %v393_v60 = vpop.permute.xlu0 %392 }
 0x150   : > { %v399_v0 = vadd.f32 %v398_v59, %v393_v60 }
 0x152   : > { %v400_v2 = vsub.f32 %v399_v0, %v389_v63 }
 0x154   : > { %607 = vrcp.f32 %v400_v2  ;;  %v405_v11 = vmul.f32 %v606_v5, %v400_v2 }
 0x15e   : > { %v608_v6 = vpop.eup %607 }
 0x15f   : > { %v404_v10 = vmul.f32 %v608_v6, %v389_v63 }
 0x161   : > { %v406_v15 = vadd.f32 %v405_v11, %v404_v10 }
 0x163   : > { %v407_v22 = vsub.f32 1.0, %v406_v15 }
 0x167   : > { %v236_v3 = vpop.xlane.xlu1 %235 }
 0x168   : > { %609 = vrcp.f32 %v236_v3 }
 0x172   : > { %v610_v12 = vpop.eup %609 }
 0x173   : > { %v238_v16 = vmul.f32 -1.0, %v610_v12 }
 0x1ae   : > { %v293_v17 = vpop.f32.mrb[0].mxu0 }
 0x1af   : > { %v299_v18 = vmul.f32 %v293_v17, %v238_v16  ;;  %v533_v20 = vpop.f32.mrb[1].mxu0 }
 0x1b0   : > { %v296_v21 = vpop.f32.mrb[2].mxu0 }
 0x1b1   : > { %v408_v23 = vadd.f32 %v355_v19, %v299_v18  ;;  %v534_v24 = vpop.f32.mrb[3].mxu0 }
 0x1b3   : > { %v409_v25 = vadd.f32 %v408_v23, %v407_v22 }
 0x1b5   : > { %410 = vst [vmem:[%s216_s14] sm:$0xff] %v409_v25 }
 0x1b6   : > { %652 = shalt.err (!%p649_p7)
}
 0x1b7   : > { %s653_s6 = scalar_lea.hbm %s845_s28, 128  ;;  %s657_s9 = scalar_lea.hbm %s891_s4, 256 }
 0x1b8   : > { %p654_p8 = scmp.ne.s32.totalorder %s845_s28, %s653_s6  ;;  %p658_p1 = scmp.lt.u32.totalorder %s845_s28, %s891_s4 }
 0x1b9   : > { %p659_p0 = scmp.lt.u32.totalorder %s657_s9, %s653_s6  ;;  %p661_p6 = scmp.lt.u32.totalorder %s653_s6, %s845_s28 }
 0x1ba   : > { %p655_p11 = pnand %p654_p8, %p902_p9 }
 0x1bb   : > { %p660_p5 = por %p659_p0, %p658_p1 }
 0x1bc   : > { %p656_p13 = pneg %p655_p11 }
 0x1bd   : > { %p662_p10 = por %p661_p6, %p660_p5 }
 0x1bf   : > { %p663_p12 = pnand %p662_p10, %p656_p13 }
 0x1c1   : > { %666 = shalt.err (!%p663_p12)
}
 0x1c2   : > { %539 = dma.vmem_to_hbm [thread:$0]  (%p902_p9), %s847_s20, 128, %s845_s28, %s412_s30  }
 0x1c3 PF: > { %p551_p2 = scmp.ge.s32.totalorder %s705_s18, 2  ;;  %s437_s12 = sand.u32 1, %s693_s15  }
 0x1c4   : > { %p903_p3 = scmp.ne.s32.totalorder %s896_s26, 0  ;;  %s438_s13 = scalar_lea.sflag [#allocation4], %s437_s12 }
 0x1c6   : > { %p546_p4 = pnand %p551_p2, %p903_p3 }
 0x1c8   : > { %688 = dma.done.wait (!%p546_p4), %s438_s13, 128  }
 0x1c9   : > { %690 = vsyncadd (!%p546_p4), %s438_s13, 4294967168  ;;  %p15_p7 = scmp.ge.s32.totalorder %s768_s21, 4   ;;  %s904_s15 = smov %s697_s16 }
 0x1ca   : > { %s905_s16 = smov %s701_s17  ;;  %s906_s17 = smov %s779_s24 }
 0x1cb   : > { %s907_s18 = smov %s768_s21  ;;  %17 = sbr.rel (!%p15_p7) target bundleno = 4 (0x4), region = 79 }
 0x1d2   :  { %443 = vsyncpa [#allocation3], 1 }
 0x1d3   :  { %445 = vsyncpa [#allocation3 + $0x1], 1 }
 0x1d4   :  { %446 = vsyncpa [#allocation4], 1 }
 0x1d5   :  { %448 = vsyncpa [#allocation4 + $0x1], 1 }

</bundles_post_ra>
